<compile_context>
chip_gen: v7x
topology: tpu7x:2x2x1
jax: 0.10.0
libtpu: 0.0.40
codegen_flags: <defaults>
</compile_context>

<pallas_src>
import jax
import jax.numpy as jnp
from jax.experimental import pallas as pl
from jax.experimental.pallas import tpu as pltpu

LANE = 128


def _round_up(v, m):
    return ((v + m - 1) // m) * m


def _sage2_fused_kernel(a_ref, x_ref, wcat1_ref, b1_ref, wcat2_ref, b2_ref,
                        o_ref):
    """Fused 2-layer GraphSAGE: (mean-agg + concat-matmul + bias + ReLU) x 2."""
    a = a_ref[...]                 # (N, N)   bf16, row-normalized adjacency
    x = x_ref[...]                 # (N, Fp)  bf16, zero-padded node features

    # ---- layer 1: neighbor mean + single concatenated projection + bias + ReLU
    h_neigh = jnp.dot(a, x, preferred_element_type=jnp.float32)          # (N, Fp) f32
    x_cat = jnp.concatenate([x, h_neigh.astype(x.dtype)], axis=-1)       # (N, 2Fp) bf16
    h = jnp.dot(x_cat, wcat1_ref[...], preferred_element_type=jnp.float32)
    h = jnp.maximum(h + b1_ref[...], 0.0)                                # (N, Hp) f32

    # ---- layer 2: same structure; h stays on-chip (never written to HBM)
    h_bf = h.astype(x.dtype)
    h_neigh2 = jnp.dot(a, h_bf, preferred_element_type=jnp.float32)      # (N, Hp) f32
    h_cat = jnp.concatenate([h_bf, h_neigh2.astype(x.dtype)], axis=-1)   # (N, 2Hp) bf16
    out = jnp.dot(h_cat, wcat2_ref[...], preferred_element_type=jnp.float32)
    o_ref[...] = (out + b2_ref[...]).astype(o_ref.dtype)                 # (N, Op) f32


def sage_forward(a_norm, x, params):
    """Two-layer SAGE forward (conv1 -> ReLU -> conv2) in one Pallas kernel."""
    n, in_feats = x.shape
    h_feats = params["w_self1"].shape[1]
    out_feats = params["w_self2"].shape[1]

    # Lane-dense padded feature widths (multiples of 128).
    fp = _round_up(max(in_feats, LANE), LANE)
    hp = _round_up(max(h_feats, LANE), LANE)
    op = _round_up(max(out_feats, LANE), LANE)

    # bf16 inputs; zero-pad feature lanes so every operand/output is 128-wide.
    a_bf = a_norm.astype(jnp.bfloat16)
    x_bf = jnp.zeros((n, fp), jnp.bfloat16).at[:, :in_feats].set(
        x.astype(jnp.bfloat16))

    # Concatenated weights:  [x | A@x] @ [[W_self], [W_neigh]]  (one MXU pass).
    wcat1 = jnp.zeros((2 * fp, hp), jnp.bfloat16)
    wcat1 = wcat1.at[:in_feats, :h_feats].set(
        params["w_self1"].astype(jnp.bfloat16))
    wcat1 = wcat1.at[fp:fp + in_feats, :h_feats].set(
        params["w_neigh1"].astype(jnp.bfloat16))
    b1 = jnp.zeros((1, hp), jnp.float32).at[:, :h_feats].set(params["b1"])

    wcat2 = jnp.zeros((2 * hp, op), jnp.bfloat16)
    wcat2 = wcat2.at[:h_feats, :out_feats].set(
        params["w_self2"].astype(jnp.bfloat16))
    wcat2 = wcat2.at[hp:hp + h_feats, :out_feats].set(
        params["w_neigh2"].astype(jnp.bfloat16))
    b2 = jnp.zeros((1, op), jnp.float32).at[:, :out_feats].set(params["b2"])

    def full(shape):
        nd = len(shape)
        return pl.BlockSpec(shape, lambda i, _nd=nd: (0,) * _nd)

    out_padded = pl.pallas_call(
        _sage2_fused_kernel,
        out_shape=jax.ShapeDtypeStruct((n, op), jnp.float32),
        grid=(1,),
        in_specs=[
            full((n, n)),          # normalized adjacency (bf16)
            full((n, fp)),         # padded node features (bf16)
            full((2 * fp, hp)),    # W_cat layer 1 (bf16)
            full((1, hp)),         # bias 1 (f32)
            full((2 * hp, op)),    # W_cat layer 2 (bf16)
            full((1, op)),         # bias 2 (f32)
        ],
        out_specs=full((n, op)),
        compiler_params=pltpu.CompilerParams(
            dimension_semantics=("arbitrary",)),
    )(a_bf, x_bf, wcat1, b1, wcat2, b2)

    return out_padded[:, :out_feats]


def init_params(key, in_feats, h_feats, out_features):
    ks = jax.random.split(key, 4)
    scale = 0.1
    return {
        "w_self1":  scale * jax.random.normal(ks[0], (in_feats, h_feats), jnp.float32),
        "w_neigh1": scale * jax.random.normal(ks[1], (in_feats, h_feats), jnp.float32),
        "b1":       jnp.zeros((1, h_feats), jnp.float32),
        "w_self2":  scale * jax.random.normal(ks[2], (h_feats, out_features), jnp.float32),
        "w_neigh2": scale * jax.random.normal(ks[3], (h_feats, out_features), jnp.float32),
        "b2":       jnp.zeros((1, out_features), jnp.float32),
    }


if __name__ == "__main__":
    N = 32            # number of graph nodes
    IN_FEATS = 16
    H_FEATS = 32
    OUT_FEATS = 8

    key = jax.random.PRNGKey(0)
    k_graph, k_feat, k_param = jax.random.split(key, 3)

    # Deterministic random graph: A[i, j] = 1 iff edge j -> i.
    adj = (jax.random.uniform(k_graph, (N, N)) < 0.3).astype(jnp.float32)
    in_deg = jnp.sum(adj, axis=1, keepdims=True)
    a_norm = adj / jnp.maximum(in_deg, 1.0)     # row-normalized 'mean' aggregator

    x = jax.random.normal(k_feat, (N, IN_FEATS), jnp.float32)
    params = init_params(k_param, IN_FEATS, H_FEATS, OUT_FEATS)

    out = jax.jit(sage_forward)(a_norm, x, params)
    jax.block_until_ready(out)

    # Pure-JAX f32 reference of the same module math.
    h_ref = jnp.maximum(
        x @ params["w_self1"] + (a_norm @ x) @ params["w_neigh1"] + params["b1"],
        0.0)
    ref = (h_ref @ params["w_self2"]
           + (a_norm @ h_ref) @ params["w_neigh2"] + params["b2"])

    assert out.shape == (N, OUT_FEATS)
    # bf16 inputs/weights with f32 accumulation -> relaxed tolerance.
    assert jnp.allclose(out, ref, atol=5e-2, rtol=5e-2), (
        float(jnp.max(jnp.abs(out - ref))))

    print("KERNEL_OK")
</pallas_src>

<mosaic_0001>
module attributes {stable_mosaic.version = 11 : i64} {
  func.func @_sage2_fused_kernel(%arg0: i32, %arg1: memref<32x32xbf16, #tpu.memory_space<vmem>>, %arg2: memref<32x128xbf16, #tpu.memory_space<vmem>>, %arg3: memref<256x128xbf16, #tpu.memory_space<vmem>>, %arg4: memref<1x128xf32, #tpu.memory_space<vmem>>, %arg5: memref<256x128xbf16, #tpu.memory_space<vmem>>, %arg6: memref<1x128xf32, #tpu.memory_space<vmem>>, %arg7: memref<32x128xf32, #tpu.memory_space<vmem>>) attributes {dimension_semantics = [#tpu.dimension_semantics<arbitrary>], iteration_bounds = array<i64: 1>, scalar_prefetch = 0 : i64, scratch_operands = 0 : i64, tpu.core_type = #tpu.core_type<tc>, window_params = [{pipeline_mode = #tpu.pipeline_mode<synchronous>, transform_indices = @transform_0, window_bounds = array<i64: 32, 32>}, {pipeline_mode = #tpu.pipeline_mode<synchronous>, transform_indices = @transform_1, window_bounds = array<i64: 32, 128>}, {pipeline_mode = #tpu.pipeline_mode<synchronous>, transform_indices = @transform_2, window_bounds = array<i64: 256, 128>}, {pipeline_mode = #tpu.pipeline_mode<synchronous>, transform_indices = @transform_3, window_bounds = array<i64: 1, 128>}, {pipeline_mode = #tpu.pipeline_mode<synchronous>, transform_indices = @transform_4, window_bounds = array<i64: 256, 128>}, {pipeline_mode = #tpu.pipeline_mode<synchronous>, transform_indices = @transform_5, window_bounds = array<i64: 1, 128>}, {pipeline_mode = #tpu.pipeline_mode<synchronous>, transform_indices = @transform_6, window_bounds = array<i64: 32, 128>}]} {
    %c0 = arith.constant 0 : index
    %c0_0 = arith.constant 0 : index
    %0 = vector.load %arg1[%c0, %c0_0] : memref<32x32xbf16, #tpu.memory_space<vmem>>, vector<32x32xbf16>
    %c0_1 = arith.constant 0 : index
    %c0_2 = arith.constant 0 : index
    %1 = vector.load %arg2[%c0_1, %c0_2] : memref<32x128xbf16, #tpu.memory_space<vmem>>, vector<32x128xbf16>
    %cst = arith.constant dense<0.000000e+00> : vector<32x128xf32>
    %2 = tpu.matmul %0, %1, %cst {dimension_numbers = #tpu.dot_dimension_numbers<[1], [0], [0], [1], [0, 0, 1, 1], [], []>} : vector<32x32xbf16>, vector<32x128xbf16>, vector<32x128xf32> -> vector<32x128xf32>
    %3 = arith.truncf %2 : vector<32x128xf32> to vector<32x128xbf16>
    %4 = tpu.concatenate %1, %3 in 1 : vector<32x128xbf16>, vector<32x128xbf16> -> vector<32x256xbf16>
    %c0_3 = arith.constant 0 : index
    %c0_4 = arith.constant 0 : index
    %5 = vector.load %arg3[%c0_3, %c0_4] : memref<256x128xbf16, #tpu.memory_space<vmem>>, vector<256x128xbf16>
    %cst_5 = arith.constant dense<0.000000e+00> : vector<32x128xf32>
    %6 = tpu.matmul %4, %5, %cst_5 {dimension_numbers = #tpu.dot_dimension_numbers<[1], [0], [0], [1], [0, 0, 1, 1], [], []>} : vector<32x256xbf16>, vector<256x128xbf16>, vector<32x128xf32> -> vector<32x128xf32>
    %c0_6 = arith.constant 0 : index
    %c0_7 = arith.constant 0 : index
    %7 = vector.load %arg4[%c0_6, %c0_7] : memref<1x128xf32, #tpu.memory_space<vmem>>, vector<1x128xf32>
    %8 = vector.broadcast %7 : vector<1x128xf32> to vector<32x128xf32>
    %9 = arith.addf %6, %8 : vector<32x128xf32>
    %cst_8 = arith.constant 0.000000e+00 : f32
    %10 = vector.broadcast %cst_8 : f32 to vector<32x128xf32>
    %11 = arith.maximumf %9, %10 : vector<32x128xf32>
    %12 = arith.truncf %11 : vector<32x128xf32> to vector<32x128xbf16>
    %cst_9 = arith.constant dense<0.000000e+00> : vector<32x128xf32>
    %13 = tpu.matmul %0, %12, %cst_9 {dimension_numbers = #tpu.dot_dimension_numbers<[1], [0], [0], [1], [0, 0, 1, 1], [], []>} : vector<32x32xbf16>, vector<32x128xbf16>, vector<32x128xf32> -> vector<32x128xf32>
    %14 = arith.truncf %13 : vector<32x128xf32> to vector<32x128xbf16>
    %15 = tpu.concatenate %12, %14 in 1 : vector<32x128xbf16>, vector<32x128xbf16> -> vector<32x256xbf16>
    %c0_10 = arith.constant 0 : index
    %c0_11 = arith.constant 0 : index
    %16 = vector.load %arg5[%c0_10, %c0_11] : memref<256x128xbf16, #tpu.memory_space<vmem>>, vector<256x128xbf16>
    %cst_12 = arith.constant dense<0.000000e+00> : vector<32x128xf32>
    %17 = tpu.matmul %15, %16, %cst_12 {dimension_numbers = #tpu.dot_dimension_numbers<[1], [0], [0], [1], [0, 0, 1, 1], [], []>} : vector<32x256xbf16>, vector<256x128xbf16>, vector<32x128xf32> -> vector<32x128xf32>
    %c0_13 = arith.constant 0 : index
    %c0_14 = arith.constant 0 : index
    %18 = vector.load %arg6[%c0_13, %c0_14] : memref<1x128xf32, #tpu.memory_space<vmem>>, vector<1x128xf32>
    %19 = vector.broadcast %18 : vector<1x128xf32> to vector<32x128xf32>
    %20 = arith.addf %17, %19 : vector<32x128xf32>
    %c0_15 = arith.constant 0 : index
    %c0_16 = arith.constant 0 : index
    %21 = vector.load %arg7[%c0_15, %c0_16] : memref<32x128xf32, #tpu.memory_space<vmem>>, vector<32x128xf32>
    tpu.vector_store %arg7[%c0_15, %c0_16], %20 {strides = array<i32>} : memref<32x128xf32, #tpu.memory_space<vmem>>, vector<32x128xf32>,
    return
  }
  func.func @transform_0(%arg0: i32) -> (i32, i32) {
    %c0_i32 = arith.constant 0 : i32
    %c0_i32_0 = arith.constant 0 : i32
    %c0_i32_1 = arith.constant 0 : i32
    return %c0_i32, %c0_i32_0 : i32, i32
  }
  func.func @transform_1(%arg0: i32) -> (i32, i32) {
    %c0_i32 = arith.constant 0 : i32
    %c0_i32_0 = arith.constant 0 : i32
    %c0_i32_1 = arith.constant 0 : i32
    return %c0_i32, %c0_i32_0 : i32, i32
  }
  func.func @transform_2(%arg0: i32) -> (i32, i32) {
    %c0_i32 = arith.constant 0 : i32
    %c0_i32_0 = arith.constant 0 : i32
    %c0_i32_1 = arith.constant 0 : i32
    return %c0_i32, %c0_i32_0 : i32, i32
  }
  func.func @transform_3(%arg0: i32) -> (i32, i32) {
    %c0_i32 = arith.constant 0 : i32
    %c0_i32_0 = arith.constant 0 : i32
    %c0_i32_1 = arith.constant 0 : i32
    return %c0_i32, %c0_i32_0 : i32, i32
  }
  func.func @transform_4(%arg0: i32) -> (i32, i32) {
    %c0_i32 = arith.constant 0 : i32
    %c0_i32_0 = arith.constant 0 : i32
    %c0_i32_1 = arith.constant 0 : i32
    return %c0_i32, %c0_i32_0 : i32, i32
  }
  func.func @transform_5(%arg0: i32) -> (i32, i32) {
    %c0_i32 = arith.constant 0 : i32
    %c0_i32_0 = arith.constant 0 : i32
    %c0_i32_1 = arith.constant 0 : i32
    return %c0_i32, %c0_i32_0 : i32, i32
  }
  func.func @transform_6(%arg0: i32) -> (i32, i32) {
    %c0_i32 = arith.constant 0 : i32
    %c0_i32_0 = arith.constant 0 : i32
    %c0_i32_1 = arith.constant 0 : i32
    return %c0_i32, %c0_i32_0 : i32, i32
  }
}

</mosaic_0001>

<bundles_post_ra>
// kernel: sage_forward.1
= control target key start
LH: loop header
LB: loop body
LE: loop exit
PB: predicated region body
PF: predicated region fallthrough
CT: control target
= control target key end

     0   :  { %vm54_vm0 = vcmask 261120   ;;  %s872_s1 = inlined_call_operand.vmem [shape: bf16[32,128], index: 1, kind: input, shape index: {}]   ;;  %s873_s0 = inlined_call_operand.vmem [shape: bf16[32,32], index: 0, kind: input, shape index: {}]   ;;  %s874_s2 = inlined_call_operand.vmem [shape: bf16[256,128], index: 2, kind: input, shape index: {}]   ;;  %s875_s4 = inlined_call_operand.vmem [shape: bf16[256,128], index: 4, kind: input, shape index: {}]   ;;  %s876_s3 = inlined_call_operand.vmem [shape: f32[1,128], index: 3, kind: input, shape index: {}]   ;;  %s877_s5 = inlined_call_operand.vmem [shape: f32[1,128], index: 5, kind: input, shape index: {}]   ;;  %s878_s6 = inlined_call_operand.vmem [shape: f32[32,128], index: 6, kind: output, shape index: {}]  }
   0x1   :  { %v667_v0 = vld [vmem:[%s872_s1] sm:$0xff]   ;;  %v668_v1 = vld [vmem:[%s872_s1 + $0x8] sm:$0xff]   ;;  %v675_v8 = vld [vmem:[%s874_s2 + $0x50] sm:$0xff]  }
   0x2   :  { %651 = vmatprep.subr.bf16.mxu1 %v667_v0  ;;  %v669_v2 = vld [vmem:[%s873_s0] sm:$0xff]   ;;  %v755_v4 = vld [vmem:[%s873_s0 + $0x8] sm:$0xff]   ;;  %v676_v9 = vld [vmem:[%s874_s2 + $0x10] sm:$0xff]  }
   0x3   :  { %652 = vmatpush3.bf16.msra.mxu1 %v667_v0  ;;  %655 = vmatprep.mubr.msk.bf16.mxu1 %vm54_vm0, %v669_v2  ;;  %v671_v3 = vld [vmem:[%s874_s2 + $0x40] sm:$0xff]   ;;  %v673_v6 = vld [vmem:[%s874_s2 + $0x48] sm:$0xff]   ;;  %v677_v10 = vld [vmem:[%s874_s2 + $0x58] sm:$0xff]  }
   0x4   :  { %653 = vmatprep.subr.bf16.mxu1 %v668_v1  ;;  %663 = vmatprep.mubr.msk.bf16.mxu0 %vm54_vm0, %v669_v2  ;;  %v672_v5 = vld [vmem:[%s874_s2] sm:$0xff]   ;;  %v674_v7 = vld [vmem:[%s874_s2 + $0x8] sm:$0xff]   ;;  %v678_v11 = vld [vmem:[%s874_s2 + $0x18] sm:$0xff]  }
   0x5   :  { %v679_v12 = vld [vmem:[%s874_s2 + $0x60] sm:$0xff]   ;;  %v681_v14 = vld [vmem:[%s874_s2 + $0x68] sm:$0xff]   ;;  %v683_v16 = vld [vmem:[%s874_s2 + $0x70] sm:$0xff]  }
   0x6   :  { %v680_v13 = vld [vmem:[%s874_s2 + $0x20] sm:$0xff]   ;;  %v682_v15 = vld [vmem:[%s874_s2 + $0x28] sm:$0xff]   ;;  %v684_v17 = vld [vmem:[%s874_s2 + $0x30] sm:$0xff]  }
   0x7   :  { %654 = vmatpush3.bf16.msra.mxu1 %v668_v1  ;;  %v685_v18 = vld [vmem:[%s874_s2 + $0x78] sm:$0xff]   ;;  %v551_v27 = vld [vmem:[%s876_s3] ss:$0 sm:$0xff]  ;;  %v689_v51 = vld [vmem:[%s875_s4 + $0x48] sm:$0xff]  }
   0x8   :  { %591 = vmatprep.subr.bf16.mxu1 %v671_v3  ;;  %v686_v19 = vld [vmem:[%s874_s2 + $0x38] sm:$0xff]   ;;  %v687_v49 = vld [vmem:[%s875_s4 + $0x40] sm:$0xff]   ;;  %v690_v52 = vld [vmem:[%s875_s4 + $0x8] sm:$0xff]  }
   0x9   :  { %v688_v50 = vld [vmem:[%s875_s4] sm:$0xff]   ;;  %v691_v53 = vld [vmem:[%s875_s4 + $0x50] sm:$0xff]   ;;  %v693_v55 = vld [vmem:[%s875_s4 + $0x58] sm:$0xff]  }
   0xa   :  { %656 = vmatmul.mubr.msk.bf16.vlgmr.msra.gmra.mrb[0].mxu1 %vm54_vm0, %v755_v4  ;;  %v692_v54 = vld [vmem:[%s875_s4 + $0x10] sm:$0xff]   ;;  %v694_v56 = vld [vmem:[%s875_s4 + $0x18] sm:$0xff]   ;;  %v695_v57 = vld [vmem:[%s875_s4 + $0x60] sm:$0xff]  }
   0xb   :  { %592 = vmatpush3.bf16.msra.mxu1 %v672_v5  ;;  %v696_v58 = vld [vmem:[%s875_s4 + $0x20] sm:$0xff]   ;;  %v697_v59 = vld [vmem:[%s875_s4 + $0x68] sm:$0xff]   ;;  %v699_v61 = vld [vmem:[%s875_s4 + $0x70] sm:$0xff]  }
   0xc   :  { %593 = vmatprep.subr.bf16.mxu1 %v673_v6  ;;  %v698_v60 = vld [vmem:[%s875_s4 + $0x28] sm:$0xff]   ;;  %v700_v62 = vld [vmem:[%s875_s4 + $0x30] sm:$0xff]   ;;  %v701_v63 = vld [vmem:[%s875_s4 + $0x78] sm:$0xff]  }
   0xf   :  { %594 = vmatpush3.bf16.msra.mxu1 %v674_v7 }
  0x10   :  { %595 = vmatprep.subr.bf16.mxu1 %v675_v8  ;;  %v570_v8 = vld [vmem:[%s877_s5] ss:$0 sm:$0xff] }
  0x13   :  { %596 = vmatpush3.bf16.msra.mxu1 %v676_v9 }
  0x14   :  { %597 = vmatprep.subr.bf16.mxu1 %v677_v10 }
  0x17   :  { %598 = vmatpush3.bf16.msra.mxu1 %v678_v11 }
  0x18   :  { %599 = vmatprep.subr.bf16.mxu1 %v679_v12 }
  0x1b   :  { %600 = vmatpush3.bf16.msra.mxu1 %v680_v13 }
  0x1c   :  { %601 = vmatprep.subr.bf16.mxu1 %v681_v14 }
  0x1f   :  { %602 = vmatpush3.bf16.msra.mxu1 %v682_v15 }
  0x20   :  { %603 = vmatprep.subr.bf16.mxu1 %v683_v16 }
  0x23   :  { %604 = vmatpush3.bf16.msra.mxu1 %v684_v17 }
  0x24   :  { %605 = vmatprep.subr.bf16.mxu1 %v685_v18 }
  0x27   :  { %606 = vmatpush3.bf16.msra.mxu1 %v686_v19 }
  0xdd   :  { %v657_v20 = vpop.f32.mrb[0].mxu1 }
  0xde   :  { %v95_v21 = vpop.f32.mrb[1].mxu1 }
  0xdf   :  { %v658_v22 = vpop.f32.mrb[2].mxu1 }
  0xe0   :  { %v111_v23 = vpack.c.bf16 %v658_v22, %v657_v20  ;;  %v98_v24 = vpop.f32.mrb[3].mxu1 }
  0xe1   :  { %v110_v25 = vpack.c.bf16 %v98_v24, %v95_v21 }
  0xe3   :  { %279 = vmatprep.mubr.bf16.mxu1 %v110_v25 }
  0xe4   :  { %280 = vmatmul.mubr.bf16.vlgmr.msra.gmra.mrb[4].mxu1 %v667_v0  ;;  %v702_v0 = vld [vmem:[%s875_s4 + $0x38] sm:$0xff]  }
  0xe5   :  { %287 = vmatprep.mubr.bf16.mxu1 %v111_v23 }
  0xec   :  { %288 = vmatmul.mubr.bf16.gmra.mrb[8].mxu1 %v668_v1 }
 0x1b7   :  { %v607_v26 = vpop.f32.mrb[4].mxu1 }
 0x1b8   :  { %v608_v28 = vpop.f32.mrb[5].mxu1 }
 0x1b9   :  { %v609_v29 = vadd.f32 %v608_v28, %v607_v26  ;;  %v610_v30 = vpop.f32.mrb[6].mxu1 }
 0x1ba   :  { %v611_v31 = vpop.f32.mrb[7].mxu1 }
 0x1bb   :  { %v282_v32 = vadd.f32 %v609_v29, %v551_v27  ;;  %v612_v33 = vadd.f32 %v611_v31, %v610_v30 }
 0x1bd   :  { %v285_v34 = vadd.f32 %v612_v33, %v551_v27  ;;  %v296_v35 = vmax.f32 %v282_v32, 0.0 }
 0x1bf   :  { %v297_v36 = vmax.f32 %v285_v34, 0.0  ;;  %v613_v37 = vpop.f32.mrb[8].mxu1 }
 0x1c0   :  { %v614_v38 = vpop.f32.mrb[9].mxu1 }
 0x1c1   :  { %v615_v39 = vadd.f32 %v614_v38, %v613_v37  ;;  %v616_v40 = vpop.f32.mrb[10].mxu1  ;;  %v300_v41 = vpack.c.bf16 %v297_v36, %v296_v35 }
 0x1c2   :  { %v617_v42 = vpop.f32.mrb[11].mxu1 }
 0x1c3   :  { %v290_v43 = vadd.f32 %v615_v39, %v551_v27  ;;  %v618_v44 = vadd.f32 %v617_v42, %v616_v40  ;;  %659 = vmatprep.subr.bf16.mxu0 %v300_v41 }
 0x1c4   :  { %660 = vmatpush3.bf16.msra.mxu0 %v300_v41 }
 0x1c5   :  { %v293_v45 = vadd.f32 %v618_v44, %v551_v27  ;;  %v298_v46 = vmax.f32 %v290_v43, 0.0 }
 0x1c7   :  { %v299_v47 = vmax.f32 %v293_v45, 0.0 }
 0x1c9   :  { %v301_v48 = vpack.c.bf16 %v299_v47, %v298_v46 }
 0x1cb   :  { %661 = vmatprep.subr.bf16.mxu0 %v301_v48 }
 0x1cc   :  { %662 = vmatpush3.bf16.msra.mxu0 %v301_v48 }
 0x1cd   :  { %623 = vmatprep.subr.bf16.mxu0 %v687_v49 }
 0x1cf   :  { %664 = vmatmul.mubr.msk.bf16.vlgmr.msra.gmra.mrb[0].mxu0 %vm54_vm0, %v755_v4 }
 0x1d0   :  { %624 = vmatpush3.bf16.msra.mxu0 %v688_v50 }
 0x1d1   :  { %625 = vmatprep.subr.bf16.mxu0 %v689_v51 }
 0x1d4   :  { %626 = vmatpush3.bf16.msra.mxu0 %v690_v52 }
 0x1d5   :  { %627 = vmatprep.subr.bf16.mxu0 %v691_v53 }
 0x1d8   :  { %628 = vmatpush3.bf16.msra.mxu0 %v692_v54 }
 0x1d9   :  { %629 = vmatprep.subr.bf16.mxu0 %v693_v55 }
 0x1dc   :  { %630 = vmatpush3.bf16.msra.mxu0 %v694_v56 }
 0x1dd   :  { %631 = vmatprep.subr.bf16.mxu0 %v695_v57 }
 0x1e0   :  { %632 = vmatpush3.bf16.msra.mxu0 %v696_v58 }
 0x1e1   :  { %633 = vmatprep.subr.bf16.mxu0 %v697_v59 }
 0x1e4   :  { %634 = vmatpush3.bf16.msra.mxu0 %v698_v60 }
 0x1e5   :  { %635 = vmatprep.subr.bf16.mxu0 %v699_v61 }
 0x1e8   :  { %636 = vmatpush3.bf16.msra.mxu0 %v700_v62 }
 0x1e9   :  { %637 = vmatprep.subr.bf16.mxu0 %v701_v63 }
 0x1ec   :  { %638 = vmatpush3.bf16.msra.mxu0 %v702_v0 }
 0x2a2   :  { %v665_v1 = vpop.f32.mrb[0].mxu0 }
 0x2a3   :  { %v336_v2 = vpop.f32.mrb[1].mxu0 }
 0x2a4   :  { %v666_v3 = vpop.f32.mrb[2].mxu0 }
 0x2a5   :  { %v352_v4 = vpack.c.bf16 %v666_v3, %v665_v1  ;;  %v339_v5 = vpop.f32.mrb[3].mxu0 }
 0x2a6   :  { %v351_v6 = vpack.c.bf16 %v339_v5, %v336_v2 }
 0x2a8   :  { %520 = vmatprep.mubr.bf16.mxu0 %v351_v6 }
 0x2a9   :  { %521 = vmatmul.mubr.bf16.vlgmr.msra.gmra.mrb[4].mxu0 %v300_v41 }
 0x2aa   :  { %528 = vmatprep.mubr.bf16.mxu0 %v352_v4 }
 0x2b1   :  { %529 = vmatmul.mubr.bf16.gmra.mrb[8].mxu0 %v301_v48 }
 0x37c   :  { %v639_v7 = vpop.f32.mrb[4].mxu0 }
 0x37d   :  { %v640_v9 = vpop.f32.mrb[5].mxu0 }
 0x37e   :  { %v641_v10 = vadd.f32 %v640_v9, %v639_v7  ;;  %v642_v11 = vpop.f32.mrb[6].mxu0 }
 0x37f   :  { %v643_v12 = vpop.f32.mrb[7].mxu0 }
 0x380   :  { %v523_v13 = vadd.f32 %v641_v10, %v570_v8  ;;  %v644_v14 = vadd.f32 %v643_v12, %v642_v11 }
 0x382   :  { %537 = vst [vmem:[%s878_s6] sm:$0xff] %v523_v13  ;;  %v526_v15 = vadd.f32 %v644_v14, %v570_v8 }
 0x384   :  { %538 = vst [vmem:[%s878_s6 + $0x8] sm:$0xff] %v526_v15  ;;  %v645_v16 = vpop.f32.mrb[8].mxu0 }
 0x385   :  { %v646_v17 = vpop.f32.mrb[9].mxu0 }
 0x386   :  { %v647_v18 = vadd.f32 %v646_v17, %v645_v16  ;;  %v648_v19 = vpop.f32.mrb[10].mxu0 }
 0x387   :  { %v649_v20 = vpop.f32.mrb[11].mxu0 }
 0x388   :  { %v531_v21 = vadd.f32 %v647_v18, %v570_v8  ;;  %v650_v22 = vadd.f32 %v649_v20, %v648_v19 }
 0x38a   :  { %539 = vst [vmem:[%s878_s6 + $0x10] sm:$0xff] %v531_v21  ;;  %v534_v23 = vadd.f32 %v650_v22, %v570_v8 }
 0x38c   :  { %540 = vst [vmem:[%s878_s6 + $0x18] sm:$0xff] %v534_v23 }

</bundles_post_ra>
